<compile_context>
chip_gen: v7x
topology: tpu7x:2x2x1
jax: 0.10.0
libtpu: 0.0.40
codegen_flags: <defaults>
</compile_context>

<pallas_src>
import jax
import jax.numpy as jnp
from jax.experimental import pallas as pl
from jax.experimental.pallas import tpu as pltpu

# ---- problem sizes (small, CIFAR-like but reduced) ----
N = 2          # caller batch (only len(z) matters, as in the PyTorch module)
LATENT = 32    # latent dim
C, H, W = 3, 16, 16
OUT = C * H * W          # 768 = 6 * 128 -> lane-dense output

_MAX_TM = 1024           # batch tile cap (multiple of 32; ~5 MiB VMEM at 1024)
_SUBLANE_PACK = 32       # uint8 packs 32 rows per sublane group


def _round_up(x, m):
    return ((x + m - 1) // m) * m


def _compute_dtype():
    """bf16 on v6e/v7x (bf16-capable EUP/VPU, MXU-native); f32 on v5e/older."""
    try:
        kind = jax.devices()[0].device_kind.lower()
    except Exception:
        return jnp.float32
    if ("v6" in kind) or ("v7" in kind) or ("trillium" in kind):
        return jnp.bfloat16
    return jnp.float32


def _make_kernel(compute_dtype):
    def kernel(z_ref, w_ref, b_ref, o_ref):
        # generator.generate(): linear + bias + tanh  (MXU f32-acc + EUP tanh)
        h = jnp.dot(z_ref[...], w_ref[...], preferred_element_type=jnp.float32)
        x = jnp.tanh(h.astype(compute_dtype) + b_ref[...])   # bf16 EUP on v6e/v7x
        # rescale(x).mul(255) == x*127.5 + 127.5 ; clamp kept (required for bf16)
        y = jnp.round(x.astype(jnp.float32) * 127.5 + 127.5)
        o_ref[...] = jnp.clip(y, 0.0, 255.0).astype(jnp.uint8)
    return kernel


def fidelity_forward(z, w, b):
    """z: (N, LATENT); w: (LATENT, OUT); b: (1, OUT) -> (N, C, H, W) uint8.

    Inputs may be f32 or bf16 (bf16 on v6e/v7x); MXU accumulates in f32 either way.
    """
    n, latent = z.shape
    out_dim = w.shape[1]
    compute_dtype = w.dtype

    # ---- batch tile selection ----
    if n <= _SUBLANE_PACK:
        # tiny batch: full-array blocks, no pad / post-slice (dispatch-bound regime)
        tm, n_pad = n, n
    elif n <= 2 * _SUBLANE_PACK:
        tm = _round_up(n, _SUBLANE_PACK)
        n_pad = tm
    else:
        # >= 2 grid steps so both v7x TensorCores get work; cap at _MAX_TM to
        # amortize per-step overhead while staying far under scoped VMEM.
        tm = min(_MAX_TM, _round_up(pl.cdiv(n, 2), _SUBLANE_PACK))
        n_pad = _round_up(n, tm)

    if n_pad != n:
        z = jnp.pad(z, ((0, n_pad - n), (0, 0)))

    out_flat = pl.pallas_call(
        _make_kernel(compute_dtype),
        out_shape=jax.ShapeDtypeStruct((n_pad, out_dim), jnp.uint8),
        grid_spec=pl.GridSpec(
            grid=(n_pad // tm,),
            in_specs=[
                pl.BlockSpec((tm, latent), lambda i: (i, 0)),          # z tile
                # w / b never change across the grid -> single pipeline buffer
                pl.BlockSpec((latent, out_dim), lambda i: (0, 0),
                             pipeline_mode=pl.Buffered(1)),            # w resident
                pl.BlockSpec((1, out_dim), lambda i: (0, 0),
                             pipeline_mode=pl.Buffered(1)),            # b resident
            ],
            out_specs=pl.BlockSpec((tm, out_dim), lambda i: (i, 0)),
        ),
        compiler_params=pltpu.CompilerParams(
            dimension_semantics=("parallel",)),
    )(z, w, b)

    # glue: drop padding rows (if any) and un-flatten to NCHW like the generator
    if n_pad != n:
        out_flat = out_flat[:n]
    return out_flat.reshape(n, C, H, W)


class SyntheticGenerator:
    """Deterministic stand-in for the wrapped (user-provided) GAN generator."""

    def __init__(self, key, param_dtype=jnp.float32):
        kw, kb, kz = jax.random.split(key, 3)
        w = (jax.random.normal(kw, (LATENT, OUT), jnp.float32)
             * (1.0 / jnp.sqrt(LATENT)))
        b = jax.random.normal(kb, (1, OUT), jnp.float32) * 0.1
        # cast once at construction (bf16 on v6e/v7x: MXU-native, half the DMA)
        self.w = w.astype(param_dtype)
        self.b = b.astype(param_dtype)
        self.param_dtype = param_dtype
        self._noise_key = kz

    def generate(self, n):
        # generator.generate(n) samples its own latent noise (deterministic key)
        z = jax.random.normal(self._noise_key, (n, LATENT), jnp.float32)
        return z.astype(self.param_dtype), self.w, self.b


class FidelityWrapper:
    def __init__(self, generator):
        self.generator = generator

    def __call__(self, z):
        # forward(z): only len(z) is used; the generator draws its own noise
        zg, w, b = self.generator.generate(z.shape[0])
        return fidelity_forward(zg, w, b)


if __name__ == "__main__":
    compute_dtype = _compute_dtype()

    key = jax.random.PRNGKey(0)
    kgen, kz = jax.random.split(key)
    gen = SyntheticGenerator(kgen, param_dtype=compute_dtype)
    wrapper = FidelityWrapper(gen)

    # caller-side z (only its length matters, matching the PyTorch module)
    z = jax.random.normal(kz, (N, LATENT), jnp.float32)

    out = jax.block_until_ready(wrapper(z))

    assert out.shape == (N, C, H, W)
    assert out.dtype == jnp.uint8

    # reference check in plain JAX mirroring the kernel's dtypes / folded math
    zg, w, b = gen.generate(N)
    h = jnp.dot(zg, w, preferred_element_type=jnp.float32)
    x = jnp.tanh(h.astype(compute_dtype) + b)
    ref = jnp.clip(jnp.round(x.astype(jnp.float32) * 127.5 + 127.5), 0, 255)
    ref = ref.astype(jnp.uint8).reshape(N, C, H, W)
    # <=2 LSB: MXU accumulation order + bf16 EUP tanh vs XLA tanh rounding
    diff = int(jnp.max(jnp.abs(out.astype(jnp.int32) - ref.astype(jnp.int32))))
    assert diff <= 2, f"max uint8 diff {diff} > 2"

    print("KERNEL_OK")
</pallas_src>

<mosaic_0001>
module attributes {stable_mosaic.version = 11 : i64} {
  func.func @kernel(%arg0: i32, %arg1: memref<2x32xf32, #tpu.memory_space<vmem>>, %arg2: memref<32x768xf32, #tpu.memory_space<vmem>>, %arg3: memref<1x768xf32, #tpu.memory_space<vmem>>, %arg4: memref<2x768xi8, #tpu.memory_space<vmem>>) attributes {dimension_semantics = [#tpu.dimension_semantics<parallel>], iteration_bounds = array<i64: 1>, scalar_prefetch = 0 : i64, scratch_operands = 0 : i64, tpu.core_type = #tpu.core_type<tc>, window_params = [{transform_indices = @transform_0, window_bounds = array<i64: 2, 32>}, {pipeline_mode = #tpu.pipeline_mode<synchronous>, transform_indices = @transform_1, window_bounds = array<i64: 32, 768>}, {pipeline_mode = #tpu.pipeline_mode<synchronous>, transform_indices = @transform_2, window_bounds = array<i64: 1, 768>}, {transform_indices = @transform_3, window_bounds = array<i64: 2, 768>}]} {
    %c0 = arith.constant 0 : index
    %c0_0 = arith.constant 0 : index
    %0 = vector.load %arg1[%c0, %c0_0] : memref<2x32xf32, #tpu.memory_space<vmem>>, vector<2x32xf32>
    %c0_1 = arith.constant 0 : index
    %c0_2 = arith.constant 0 : index
    %1 = vector.load %arg2[%c0_1, %c0_2] : memref<32x768xf32, #tpu.memory_space<vmem>>, vector<32x768xf32>
    %cst = arith.constant dense<0.000000e+00> : vector<2x768xf32>
    %2 = tpu.matmul %0, %1, %cst {dimension_numbers = #tpu.dot_dimension_numbers<[1], [0], [0], [1], [0, 0, 1, 1], [], []>} : vector<2x32xf32>, vector<32x768xf32>, vector<2x768xf32> -> vector<2x768xf32>
    %c0_3 = arith.constant 0 : index
    %c0_4 = arith.constant 0 : index
    %3 = vector.load %arg3[%c0_3, %c0_4] : memref<1x768xf32, #tpu.memory_space<vmem>>, vector<1x768xf32>
    %4 = vector.broadcast %3 : vector<1x768xf32> to vector<2x768xf32>
    %5 = arith.addf %2, %4 : vector<2x768xf32>
    %6 = math.tanh %5 : vector<2x768xf32>
    %cst_5 = arith.constant 1.275000e+02 : f32
    %7 = vector.broadcast %cst_5 : f32 to vector<2x768xf32>
    %8 = arith.mulf %6, %7 : vector<2x768xf32>
    %cst_6 = arith.constant 1.275000e+02 : f32
    %9 = vector.broadcast %cst_6 : f32 to vector<2x768xf32>
    %10 = arith.addf %8, %9 : vector<2x768xf32>
    %11 = math.roundeven %10 : vector<2x768xf32>
    %cst_7 = arith.constant 0.000000e+00 : f32
    %cst_8 = arith.constant 2.550000e+02 : f32
    %12 = vector.broadcast %cst_7 : f32 to vector<2x768xf32>
    %13 = arith.maximumf %12, %11 : vector<2x768xf32>
    %14 = vector.broadcast %cst_8 : f32 to vector<2x768xf32>
    %15 = arith.minimumf %14, %13 : vector<2x768xf32>
    %16 = arith.fptoui %15 : vector<2x768xf32> to vector<2x768xi8>
    %c0_9 = arith.constant 0 : index
    %c0_10 = arith.constant 0 : index
    %17 = vector.load %arg4[%c0_9, %c0_10] : memref<2x768xi8, #tpu.memory_space<vmem>>, vector<2x768xi8>
    tpu.vector_store %arg4[%c0_9, %c0_10], %16 {strides = array<i32>} : memref<2x768xi8, #tpu.memory_space<vmem>>, vector<2x768xi8>,
    return
  }
  func.func @transform_0(%arg0: i32) -> (i32, i32) {
    %c0_i32 = arith.constant 0 : i32
    %c0_i32_0 = arith.constant 0 : i32
    return %arg0, %c0_i32 : i32, i32
  }
  func.func @transform_1(%arg0: i32) -> (i32, i32) {
    %c0_i32 = arith.constant 0 : i32
    %c0_i32_0 = arith.constant 0 : i32
    %c0_i32_1 = arith.constant 0 : i32
    return %c0_i32, %c0_i32_0 : i32, i32
  }
  func.func @transform_2(%arg0: i32) -> (i32, i32) {
    %c0_i32 = arith.constant 0 : i32
    %c0_i32_0 = arith.constant 0 : i32
    %c0_i32_1 = arith.constant 0 : i32
    return %c0_i32, %c0_i32_0 : i32, i32
  }
  func.func @transform_3(%arg0: i32) -> (i32, i32) {
    %c0_i32 = arith.constant 0 : i32
    %c0_i32_0 = arith.constant 0 : i32
    return %arg0, %c0_i32 : i32, i32
  }
}

</mosaic_0001>

<bundles_post_ra>
// kernel: tpu_custom_call.1
= control target key start
LH: loop header
LB: loop body
LE: loop exit
PB: predicated region body
PF: predicated region fallthrough
CT: control target
= control target key end

     0   :  { %8 = vsyncpa [#allocation3], 0  ;;  %s709_s0 = inlined_call_operand.hbm [shape: f32[2,32], index: 0, kind: input, shape index: {}]   ;;  %s710_s1 = inlined_call_operand.hbm [shape: f32[32,768], index: 1, kind: input, shape index: {}]   ;;  %s711_s2 = inlined_call_operand.vmem [shape: f32[1,768], index: 2, kind: input, shape index: {}]   ;;  %s712_s3 = inlined_call_operand.hbm [shape: u8[2,768], index: 3, kind: output, shape index: {}]  }
   0x1   :  { %9 = vsyncpa [#allocation6], 0 }
   0x2   :  { %10 = vsyncpa [#allocation4], 0  ;;  %s602_s12 = smov [#allocation2]   ;;  %s603_s14 = smov [#allocation5]  }
   0x3   :  { %s17_s13 = sshll.u32 %s602_s12, 4  ;;  %s26_s15 = sshll.u32 %s603_s14, 4  ;;  %s18_s13 = int_to_ptr.vmem [resolvable:$true] %s17_s13  ;;  %s629_s15 = int_to_ptr.vmem [resolvable:$true] %s26_s15 }
   0x4   :  { %s530_s18 = scalar_lea.hbm %s709_s0, 32 }
   0x5   :  { %p531_p0 = scmp.ne.s32.totalorder %s709_s0, %s530_s18  ;;  %p534_p1 = scmp.lt.u32.totalorder %s530_s18, %s709_s0 }
   0x7   :  { %p536_p2 = pnand %p534_p1, %p531_p0 }
   0x9   :  { %539 = shalt.err (!%p536_p2)
}
   0xa   :  { %s540_s23 = scalar_lea.vmem %s18_s13, 32  ;;  %p545_p4 = scmp.lt.s32.totalorder %s18_s13, %s18_s13 }
   0xb   :  { %p541_p3 = scmp.ne.s32.totalorder %s18_s13, %s540_s23  ;;  %p546_p5 = scmp.lt.s32.totalorder %s540_s23, %s540_s23 }
   0xd   :  { %p547_p6 = por %p546_p5, %p545_p4 }
   0xf   :  { %p548_p7 = pnand %p547_p6, %p541_p3 }
  0x11   :  { %551 = shalt.err (!%p548_p7)
}
  0x12   :  { %20 = dma.hbm_to_vmem [thread:$0]  %s709_s0, 32, %s18_s13, [#allocation3]  }
  0x13   :  { %s552_s28 = scalar_lea.hbm %s710_s1, 3072 }
  0x14   :  { %p553_p8 = scmp.ne.s32.totalorder %s710_s1, %s552_s28  ;;  %p556_p9 = scmp.lt.u32.totalorder %s552_s28, %s710_s1 }
  0x16   :  { %p558_p10 = pnand %p556_p9, %p553_p8 }
  0x18   :  { %561 = shalt.err (!%p558_p10)
}
  0x19   :  { %s562_s6 = scalar_lea.vmem %s629_s15, 3072  ;;  %p567_p12 = scmp.lt.s32.totalorder %s629_s15, %s629_s15 }
  0x1a   :  { %p563_p11 = scmp.ne.s32.totalorder %s629_s15, %s562_s6  ;;  %p568_p13 = scmp.lt.s32.totalorder %s562_s6, %s562_s6 }
  0x1c   :  { %p569_p0 = por %p568_p13, %p567_p12 }
  0x1e   :  { %p570_p1 = pnand %p569_p0, %p563_p11 }
  0x20   :  { %573 = shalt.err (!%p570_p1)
}
  0x21   :  { %s604_s0 = smov 768   ;;  %s605_s7 = smov 48  }
  0x22   :  { %32 = dma.hbm_to_vmem [thread:$0]  %s710_s1, 3072, %s629_s15, [#allocation6], %s604_s0, %s604_s0, %s605_s7  }
  0x23   :  { %596 = dma.done.wait [#allocation3], 32  }
  0x24   :  { %597 = vsyncadd [#allocation3], 4294967264 }
  0x25   :  { %598 = dma.done.wait [#allocation6], 3072  }
  0x26   :  { %599 = vsyncadd [#allocation6], 4294964224  ;;  %v606_v0 = vmov 0.0   ;;  %v43_v1 = vld [vmem:[#allocation5 + $0x8] sm:$0xff]  ;;  %v49_v2 = vld [vmem:[#allocation5 + $0x38] sm:$0xff]  ;;  %vm98_vm0 = vcmask 261120   ;;  %v68_v38 = vlaneseq }
  0x27   :  { %166 = vmatprep.mubr.f32.mxu0 %v606_v0  ;;  %237 = vmatprep.mubr.f32.mxu1 %v606_v0  ;;  %v45_v3 = vld [vmem:[#allocation5 + $0x18] sm:$0xff]  ;;  %v481_v4 = vpack.c.bf16 %v49_v2, %v43_v1  ;;  %v51_v5 = vld [vmem:[#allocation5 + $0x48] sm:$0xff]  ;;  %v42_v6 = vld [vmem:[#allocation5] sm:$0xff]  ;;  %vm433_vm1 = vcmask 1040384   ;;  %vm434_vm2 = vsmask.f32 256 }
  0x28   :  { %v48_v7 = vld [vmem:[#allocation5 + $0x30] sm:$0xff]  ;;  %v489_v8 = vpack.c.bf16 %v51_v5, %v45_v3  ;;  %v50_v11 = vld [vmem:[#allocation5 + $0x40] sm:$0xff]  ;;  %v55_v12 = vld [vmem:[#allocation5 + $0x68] sm:$0xff]  ;;  %v660_v39 = vshrl.u32 %v68_v38, 7  ;;  %vm436_vm3 = vcmask 1041409   ;;  %vm440_vm7 = vcmask 1042434  }
  0x29   :  { %v483_v9 = vpack.c.bf16 %v48_v7, %v42_v6  ;;  %v44_v10 = vld [vmem:[#allocation5 + $0x10] sm:$0xff]  ;;  %482 = vmatprep.subr.bf16.mxu0 %v481_v4  ;;  %v61_v14 = vld [vmem:[#allocation5 + $0x98] sm:$0xff]  ;;  %v63_v16 = vld [vmem:[#allocation5 + $0xa8] sm:$0xff]  ;;  %vm437_vm4 = vsmask.f32 1280  ;;  %vm444_vm11 = vcmask 1043459  }
  0x2a   :  { %v491_v13 = vpack.c.bf16 %v50_v11, %v44_v10  ;;  %v57_v15 = vld [vmem:[#allocation5 + $0x78] sm:$0xff]  ;;  %490 = vmatprep.subr.bf16.mxu1 %v489_v8  ;;  %v485_v17 = vpack.c.bf16 %v61_v14, %v55_v12  ;;  %v54_v19 = vld [vmem:[#allocation5 + $0x60] sm:$0xff]  ;;  %v60_v20 = vld [vmem:[#allocation5 + $0x90] sm:$0xff]  ;;  %v70_v40 = vsub.s32 0, %v660_v39  ;;  %v78_v42 = vsub.s32 2, %v660_v39 }
  0x2b   :  { %484 = vmatpush1.bf16.msra.mxu0 %v483_v9  ;;  %v493_v18 = vpack.c.bf16 %v63_v16, %v57_v15  ;;  %v56_v21 = vld [vmem:[#allocation5 + $0x70] sm:$0xff]  ;;  %v487_v22 = vpack.c.bf16 %v60_v20, %v54_v19  ;;  %v62_v23 = vld [vmem:[#allocation5 + $0xa0] sm:$0xff]  ;;  %v47_v24 = vld [vmem:[#allocation5 + $0x28] sm:$0xff]  ;;  %v74_v43 = vsub.s32 1, %v660_v39  ;;  %v82_v44 = vsub.s32 3, %v660_v39 }
  0x2c   :  { %492 = vmatpush1.bf16.msra.mxu1 %v491_v13  ;;  %486 = vmatprep.subr.bf16.mxu0 %v485_v17  ;;  %v495_v25 = vpack.c.bf16 %v62_v23, %v56_v21  ;;  %v53_v26 = vld [vmem:[#allocation5 + $0x58] sm:$0xff]  ;;  %v46_v27 = vld [vmem:[#allocation5 + $0x20] sm:$0xff]  ;;  %v52_v28 = vld [vmem:[#allocation5 + $0x50] sm:$0xff]  ;;  %v86_v53 = vsub.s32 4, %v660_v39  ;;  %v90_v57 = vsub.s32 5, %v660_v39  ;;  %vm448_vm15 = vcmask 1044484  }
  0x2d   :  { %494 = vmatprep.subr.bf16.mxu1 %v493_v18  ;;  %v497_v29 = vpack.c.bf16 %v53_v26, %v47_v24  ;;  %v59_v30 = vld [vmem:[#allocation5 + $0x88] sm:$0xff]  ;;  %v65_v31 = vld [vmem:[#allocation5 + $0xb8] sm:$0xff]  ;;  %v499_v33 = vpack.c.bf16 %v52_v28, %v46_v27  ;;  %v58_v35 = vld [vmem:[#allocation5 + $0x80] sm:$0xff]  ;;  %v607_v13 = vmov 1966171168  }
  0x2e   :  { %v41_v32 = vld [vmem:[#allocation2] sm:$0x3]  ;;  %v501_v34 = vpack.c.bf16 %v65_v31, %v59_v30  ;;  %v64_v36 = vld [vmem:[#allocation5 + $0xb0] sm:$0xff]  ;;  %v397_v14 = vunpack.c.l.s4 %v607_v13  ;;  %vm671_vm5 = vmand %vm433_vm1, %vm434_vm2  ;;  %vm441_vm8 = vsmask.f32 2304 }
  0x2f   :  { %488 = vmatpush1.bf16.msra.mxu0 %v487_v22  ;;  %v503_v37 = vpack.c.bf16 %v64_v36, %v58_v35  ;;  %v66_v41 = vld [vmem:[%s711_s2] sm:$0x3f]  ;;  %vm675_vm6 = vmand %vm436_vm3, %vm437_vm4  ;;  %vm445_vm12 = vsmask.f32 3328  ;;  %vm452_vm3 = vcmask 1045509   ;;  %s608_s2 = smov [#allocation7]  }
  0x30   :  { %496 = vmatpush1.bf16.msra.mxu1 %v495_v25  ;;  %498 = vmatprep.subr.bf16.mxu0 %v497_v29  ;;  %v71_v45 = vrot.slane %v66_v41, %v70_v40  ;;  %v79_v46 = vrot.slane %v66_v41, %v78_v42  ;;  %v75_v47 = vrot.slane %v66_v41, %v74_v43  ;;  %v398_v25 = vunpack.c.0.s8 %v397_v14  ;;  %vm439_vm9 = vmor %vm675_vm6, %vm671_vm5  ;;  %s465_s11 = sshll.u32 %s608_s2, 4  ;;  %s466_s11 = int_to_ptr.vmem [resolvable:$true] %s465_s11 }
  0x31   :  { %v83_v48 = vrot.slane %v66_v41, %v82_v44  ;;  %v87_v59 = vrot.slane %v66_v41, %v86_v53  ;;  %v91_v60 = vrot.slane %v66_v41, %v90_v57  ;;  %vm442_vm10 = vmand %vm440_vm7, %vm441_vm8  ;;  %vm453_vm4 = vsmask.f32 5376  ;;  %s574_s12 = scalar_lea.vmem %s466_s11, 96  ;;  %p579_p3 = scmp.lt.s32.totalorder %s466_s11, %s466_s11 }
  0x32   :  { %475 = vmatmul.mubr.msk.f32.vlgmr.msra.gmra.mrb[0].mxu0 %vm98_vm0, %v41_v32  ;;  %v401_v43 = vsub.s32 %v398_v25, %v660_v39  ;;  %vm685_vm13 = vmor %vm442_vm10, %vm439_vm9  ;;  %p575_p2 = scmp.ne.s32.totalorder %s466_s11, %s574_s12  ;;  %p580_p4 = scmp.lt.s32.totalorder %s574_s12, %s574_s12 }
  0x33   :  { %476 = vmatmul.mubr.msk.f32.vlgmr.msra.gmra.mrb[0].mxu1 %vm98_vm0, %v41_v32  ;;  %500 = vmatpush1.bf16.msra.mxu0 %v499_v33  ;;  %vm689_vm14 = vmand %vm444_vm11, %vm445_vm12 }
  0x34   :  { %502 = vmatprep.subr.bf16.mxu0 %v501_v34  ;;  %308 = vmatprep.mubr.f32.mxu0 %v606_v0  ;;  %vm447_vm1 = vmor %vm689_vm14, %vm685_vm13  ;;  %p581_p5 = por %p580_p4, %p579_p3 }
  0x35   :  { %vm454_vm6 = vmand %vm452_vm3, %vm453_vm4 }
  0x36   :  { %p582_p6 = pnand %p581_p5, %p575_p2 }
  0x37   :  { %504 = vmatpush1.bf16.msra.mxu0 %v503_v37 }
  0x3a   :  { %477 = vmatmul.mubr.msk.f32.vlgmr.msra.gmra.mrb[2].mxu0 %vm98_vm0, %v41_v32  ;;  %vm449_vm0 = vsmask.f32 4352 }
  0x3b   :  { %vm450_vm2 = vmand %vm448_vm15, %vm449_vm0 }
  0x3c   :  { %vm451_vm5 = vmor %vm450_vm2, %vm447_vm1 }
  0x3d   :  { %vm455_vm7 = vmor %vm454_vm6, %vm451_vm5 }
 0x105   :  { %v168_v49 = vpop.f32.mrb[0].mxu0 }
 0x106   :  { %v169_v50 = vadd.f32 %v168_v49, %v71_v45  ;;  %v239_v51 = vpop.f32.mrb[0].mxu1  ;;  %v170_v52 = vpop.f32.mrb[1].mxu0 }
 0x107   :  { %v240_v54 = vadd.f32 %v239_v51, %v79_v46  ;;  %v171_v55 = vadd.f32 %v170_v52, %v75_v47  ;;  %v241_v56 = vpop.f32.mrb[1].mxu1 }
 0x108   :  { %518 = vtanh.f32 %v169_v50  ;;  %v242_v58 = vadd.f32 %v241_v56, %v83_v48 }
 0x109   :  { %520 = vtanh.f32 %v240_v54 }
 0x10a   :  { %522 = vtanh.f32 %v171_v55 }
 0x10b   :  { %524 = vtanh.f32 %v242_v58 }
 0x10d   :  { %v310_v61 = vpop.f32.mrb[2].mxu0 }
 0x10e   :  { %v311_v62 = vadd.f32 %v310_v61, %v87_v59  ;;  %v312_v63 = vpop.f32.mrb[3].mxu0 }
 0x10f   :  { %v313_v0 = vadd.f32 %v312_v63, %v91_v60 }
 0x110   :  { %526 = vtanh.f32 %v311_v62 }
 0x111   :  { %528 = vtanh.f32 %v313_v0 }
 0x112   :  { %v519_v1 = vpop.eup %518 }
 0x113   :  { %v521_v2 = vpop.eup %520  ;;  %v321_v3 = vmul.f32 127.5, %v519_v1 }
 0x114   :  { %v523_v4 = vpop.eup %522  ;;  %v323_v5 = vmul.f32 127.5, %v521_v2  ;;  %v456_v2 = vld [vmem:[#allocation7] sm:$0x3f] }
 0x115   :  { %v525_v6 = vpop.eup %524  ;;  %v327_v7 = vadd.f32 127.5, %v321_v3  ;;  %v322_v8 = vmul.f32 127.5, %v523_v4 }
 0x116   :  { %v329_v9 = vadd.f32 127.5, %v323_v5  ;;  %v324_v10 = vmul.f32 127.5, %v525_v6 }
 0x117   :  { %v505_v11 = vround.rtne.f32 %v327_v7  ;;  %v328_v12 = vadd.f32 127.5, %v322_v8 }
 0x118   :  { %v507_v15 = vround.rtne.f32 %v329_v9  ;;  %v330_v16 = vadd.f32 127.5, %v324_v10 }
 0x119   :  { %v339_v17 = vmax.f32 %v505_v11, 0.0  ;;  %v506_v18 = vround.rtne.f32 %v328_v12 }
 0x11a   :  { %v527_v19 = vpop.eup %526  ;;  %v341_v20 = vmax.f32 %v507_v15, 0.0  ;;  %v508_v21 = vround.rtne.f32 %v330_v16 }
 0x11b   :  { %v529_v22 = vpop.eup %528  ;;  %v345_v23 = vmin.f32 %v339_v17, 255.0  ;;  %v340_v24 = vmax.f32 %v506_v18, 0.0  ;;  %v325_v26 = vmul.f32 127.5, %v527_v19 }
 0x11c   :  { %v347_v28 = vmin.f32 %v341_v20, 255.0  ;;  %v342_v29 = vmax.f32 %v508_v21, 0.0  ;;  %v326_v30 = vmul.f32 127.5, %v529_v22 }
 0x11d   :  { %v351_v32 = vtrunc.f32 %v345_v23  ;;  %v346_v33 = vmin.f32 %v340_v24, 255.0  ;;  %v331_v34 = vadd.f32 127.5, %v325_v26 }
 0x11e   :  { %v353_v35 = vtrunc.f32 %v347_v28  ;;  %v348_v36 = vmin.f32 %v342_v29, 255.0  ;;  %v332_v37 = vadd.f32 127.5, %v326_v30 }
 0x11f   :  { %v357_v38 = vpack.c.f32.eXmY %v351_v32, %v351_v32, 56  ;;  %v352_v40 = vtrunc.f32 %v346_v33  ;;  %v509_v41 = vround.rtne.f32 %v331_v34 }
 0x120   :  { %v369_v42 = vpack.c.f32.eXmY %v353_v35, %v353_v35, 56  ;;  %v354_v44 = vtrunc.f32 %v348_v36  ;;  %v510_v45 = vround.rtne.f32 %v332_v37 }
 0x121   :  { %v363_v46 = vpack.c.f32.eXmY %v352_v40, %v352_v40, 56  ;;  %v343_v47 = vmax.f32 %v509_v41, 0.0 }
 0x122   :  { %v375_v48 = vpack.c.f32.eXmY %v354_v44, %v354_v44, 56  ;;  %v344_v49 = vmax.f32 %v510_v45, 0.0 }
 0x123   :  { %v478_v50 = vpack.c.b8 %v363_v46, %v357_v38  ;;  %v349_v51 = vmin.f32 %v343_v47, 255.0 }
 0x124   :  { %v479_v53 = vpack.c.b8 %v375_v48, %v369_v42  ;;  %v350_v54 = vmin.f32 %v344_v49, 255.0 }
 0x125   :  { %v402_v55 = vrot.slane %v478_v50, %v401_v43  ;;  %v355_v56 = vtrunc.f32 %v349_v51 }
 0x126   :  { %v409_v57 = vrot.slane %v479_v53, %v401_v43  ;;  %v356_v58 = vtrunc.f32 %v350_v54 }
 0x127   :  { %v381_v59 = vpack.c.f32.eXmY %v355_v56, %v355_v56, 56 }
 0x128   :  { %v387_v60 = vpack.c.f32.eXmY %v356_v58, %v356_v58, 56  ;;  %v417_v61 = vcombine.low %v402_v55, %v409_v57 }
 0x12a   :  { %v480_v62 = vpack.c.b8 %v387_v60, %v381_v59  ;;  %v424_v0 = vrot.slane %v417_v61, %v401_v43 }
 0x12c   :  { %v416_v63 = vrot.slane %v480_v62, %v401_v43 }
 0x12e   :  { %v431_v1 = vrot.slane %v416_v63, %v401_v43 }
 0x130   :  { %v432_v3 = vcombine.low %v424_v0, %v431_v1 }
 0x132   :  { %v457_v4 = vsel %vm455_vm7, %v432_v3, %v456_v2 }
 0x133   :  { %458 = vst [vmem:[#allocation7] sm:$0x3f] %v457_v4 }
 0x134   :  { %585 = shalt.err (!%p582_p6)
}
 0x135   :  { %s586_s15 = scalar_lea.hbm %s712_s3, 96 }
 0x136   :  { %p587_p7 = scmp.ne.s32.totalorder %s712_s3, %s586_s15  ;;  %p590_p8 = scmp.lt.u32.totalorder %s586_s15, %s712_s3 }
 0x138   :  { %p592_p9 = pnand %p590_p8, %p587_p7 }
 0x13a   :  { %595 = shalt.err (!%p592_p9)
}
 0x13b   :  { %468 = dma.vmem_to_hbm [thread:$0]  %s466_s11, 96, %s712_s3, [#allocation4]  }
 0x13c   :  { %600 = dma.done.wait [#allocation4], 96  }
 0x13d   :  { %601 = vsyncadd [#allocation4], 4294967200 }
 0x13e   :  { %472 = vsyncpa [#allocation3], 1 }
 0x13f   :  { %473 = vsyncpa [#allocation6], 1 }
 0x140   :  { %474 = vsyncpa [#allocation4], 1 }

</bundles_post_ra>
